<compile_context>
chip_gen: v6e
topology: v6e:2x2x1
jax: 0.10.0
libtpu: 0.0.40
codegen_flags: <defaults>
</compile_context>

<pallas_src>
import math

import jax
import jax.numpy as jnp
from jax import lax
from jax.experimental import pallas as pl
from jax.experimental.pallas import tpu as pltpu

# Contract dim 1 of x (K) with dim 1 of w (K) -> (TM, TN); no transpose pass.
_NT_DIMS = (((1,), (1,)), ((), ()))


def _round_up(v, m):
    return ((v + m - 1) // m) * m


def _pad2(a, rows, cols):
    pr, pc = rows - a.shape[0], cols - a.shape[1]
    if pr == 0 and pc == 0:
        return a
    return jnp.pad(a, ((0, pr), (0, pc)))


# --------------------------------- kernels ---------------------------------

def _train_acc_kernel(x_ref, wmu_ref, wsig_ref, ein_ref, eout_ref,
                      bmu_ref, bsig_ref, o_ref, acc_ref):
    k = pl.program_id(2)

    @pl.when(k == 0)
    def _():
        acc_ref[...] = jnp.zeros_like(acc_ref)

    wdt = wmu_ref.dtype
    x = x_ref[...]
    xe = x * ein_ref[...]                                   # f32 elementwise (v5e-safe)
    pmu = lax.dot_general(x.astype(wdt), wmu_ref[...], _NT_DIMS,
                          preferred_element_type=jnp.float32)
    psig = lax.dot_general(xe.astype(wdt), wsig_ref[...], _NT_DIMS,
                           preferred_element_type=jnp.float32)
    acc_ref[...] += pmu + psig * eout_ref[...]

    @pl.when(k == pl.num_programs(2) - 1)
    def _():
        b = bmu_ref[...] + bsig_ref[...] * eout_ref[...]    # f32 bias math
        o_ref[...] = (acc_ref[...] + b).astype(o_ref.dtype)


def _train_fast_kernel(x_ref, wmu_ref, wsig_ref, ein_ref, eout_ref,
                       bmu_ref, bsig_ref, o_ref):
    wdt = wmu_ref.dtype
    x = x_ref[...]
    xe = x * ein_ref[...]
    pmu = lax.dot_general(x.astype(wdt), wmu_ref[...], _NT_DIMS,
                          preferred_element_type=jnp.float32)
    psig = lax.dot_general(xe.astype(wdt), wsig_ref[...], _NT_DIMS,
                           preferred_element_type=jnp.float32)
    b = bmu_ref[...] + bsig_ref[...] * eout_ref[...]
    o_ref[...] = (pmu + psig * eout_ref[...] + b).astype(o_ref.dtype)


def _eval_acc_kernel(x_ref, wmu_ref, bmu_ref, o_ref, acc_ref):
    k = pl.program_id(2)

    @pl.when(k == 0)
    def _():
        acc_ref[...] = jnp.zeros_like(acc_ref)

    acc_ref[...] += lax.dot_general(
        x_ref[...].astype(wmu_ref.dtype), wmu_ref[...], _NT_DIMS,
        preferred_element_type=jnp.float32)

    @pl.when(k == pl.num_programs(2) - 1)
    def _():
        o_ref[...] = (acc_ref[...] + bmu_ref[...]).astype(o_ref.dtype)


def _eval_fast_kernel(x_ref, wmu_ref, bmu_ref, o_ref):
    p = lax.dot_general(x_ref[...].astype(wmu_ref.dtype), wmu_ref[...],
                        _NT_DIMS, preferred_element_type=jnp.float32)
    o_ref[...] = (p + bmu_ref[...]).astype(o_ref.dtype)


# ------------------------------ host wrappers -------------------------------

def prepare_noisy_linear(params, *, weight_dtype=jnp.bfloat16,
                         max_tn=512, max_tk=1024):
    """Pad + cast parameters ONCE (static per noise reset / training step).

    params: dict with weight_mu/weight_sigma (Out,In), bias_mu/bias_sigma (Out,),
            eps_in (In,), eps_out (Out,).
    """
    wmu = params["weight_mu"]
    Out, In = wmu.shape

    TN = min(max_tn, _round_up(Out, 128))
    # v7x megacore: make sure there are >= 2 parallel N tiles when Out allows it.
    if _round_up(Out, TN) // TN == 1 and TN >= 256:
        TN = _round_up(TN // 2, 128)
    TK = min(max_tk, _round_up(In, 128))
    Np = _round_up(Out, TN)
    Kp = _round_up(In, TK)

    f32 = jnp.float32
    return dict(
        weight_mu=_pad2(wmu, Np, Kp).astype(weight_dtype),
        weight_sigma=_pad2(params["weight_sigma"], Np, Kp).astype(weight_dtype),
        eps_in=_pad2(params["eps_in"].reshape(1, In).astype(f32), 1, Kp),
        eps_out=_pad2(params["eps_out"].reshape(1, Out).astype(f32), 1, Np),
        bias_mu=_pad2(params["bias_mu"].reshape(1, Out).astype(f32), 1, Np),
        bias_sigma=_pad2(params["bias_sigma"].reshape(1, Out).astype(f32), 1, Np),
        meta=dict(Out=Out, In=In, Np=Np, Kp=Kp, TN=TN, TK=TK),
    )


def noisy_linear(x, prep, *, training=True, max_tm=256):
    """Pallas TPU NoisyLinear.forward.  x: (B, In) f32 -> (B, Out) f32."""
    B, In = x.shape
    meta = prep["meta"]
    assert In == meta["In"]
    Out, Np, Kp, TN, TK = meta["Out"], meta["Np"], meta["Kp"], meta["TN"], meta["TK"]

    TM = min(max_tm, _round_up(B, 8))
    Mp = _round_up(B, TM)
    xp = _pad2(x, Mp, Kp)

    gm, gn, gk = Mp // TM, Np // TN, Kp // TK

    wbytes = jnp.dtype(prep["weight_mu"].dtype).itemsize
    xbytes = jnp.dtype(x.dtype).itemsize
    n_w = 2 if training else 1
    cost = pl.CostEstimate(
        flops=2 * n_w * Mp * Np * Kp,
        transcendentals=0,
        bytes_accessed=(xbytes * Mp * Kp * gn            # x re-read per N tile
                        + wbytes * n_w * Np * Kp * gm    # weights re-read per M tile
                        + xbytes * Mp * Np),
    )

    if gk == 1:
        # Whole reduction resident: no accumulator scratch, fully parallel grid.
        x_spec = pl.BlockSpec((TM, TK), lambda i, j: (i, 0))
        w_spec = pl.BlockSpec((TN, TK), lambda i, j: (j, 0))
        kvec_spec = pl.BlockSpec((1, TK), lambda i, j: (0, 0))
        nvec_spec = pl.BlockSpec((1, TN), lambda i, j: (0, j))
        o_spec = pl.BlockSpec((TM, TN), lambda i, j: (i, j))
        grid = (gm, gn)
        scratch = []
        dims = ("parallel", "parallel")
        kern_train, kern_eval = _train_fast_kernel, _eval_fast_kernel
    else:
        x_spec = pl.BlockSpec((TM, TK), lambda i, j, k: (i, k))
        w_spec = pl.BlockSpec((TN, TK), lambda i, j, k: (j, k))
        kvec_spec = pl.BlockSpec((1, TK), lambda i, j, k: (0, k))
        nvec_spec = pl.BlockSpec((1, TN), lambda i, j, k: (0, j))
        o_spec = pl.BlockSpec((TM, TN), lambda i, j, k: (i, j))
        grid = (gm, gn, gk)
        scratch = [pltpu.VMEM((TM, TN), jnp.float32)]
        dims = ("parallel", "parallel", "arbitrary")
        kern_train, kern_eval = _train_acc_kernel, _eval_acc_kernel

    if training:
        kernel = kern_train
        inputs = (xp, prep["weight_mu"], prep["weight_sigma"],
                  prep["eps_in"], prep["eps_out"],
                  prep["bias_mu"], prep["bias_sigma"])
        in_specs = [x_spec, w_spec, w_spec, kvec_spec, nvec_spec,
                    nvec_spec, nvec_spec]
    else:
        # Eval path streams only mu weight / bias.
        kernel = kern_eval
        inputs = (xp, prep["weight_mu"], prep["bias_mu"])
        in_specs = [x_spec, w_spec, nvec_spec]

    out = pl.pallas_call(
        kernel,
        out_shape=jax.ShapeDtypeStruct((Mp, Np), x.dtype),
        grid_spec=pltpu.PrefetchScalarGridSpec(
            num_scalar_prefetch=0,
            grid=grid,
            in_specs=in_specs,
            out_specs=o_spec,
            scratch_shapes=scratch,
        ),
        compiler_params=pltpu.CompilerParams(
            dimension_semantics=dims,
            vmem_limit_bytes=48 * 1024 * 1024,   # safe on v7x (64 MiB physical)
        ),
        cost_estimate=cost,
    )(*inputs)

    return out[:B, :Out]


# ------------------------- parameter / noise init ---------------------------

def _scale_noise(key, size):
    # torch: x = randn(size); x.sign() * x.abs().sqrt()
    x = jax.random.normal(key, (size,), dtype=jnp.float32)
    return jnp.sign(x) * jnp.sqrt(jnp.abs(x))


def init_noisy_linear(key, in_features, out_features, sigma_init=0.017):
    k_wmu, k_bmu, k_ein, k_eout = jax.random.split(key, 4)
    mu_range = 1.0 / math.sqrt(in_features)

    weight_mu = jax.random.uniform(
        k_wmu, (out_features, in_features), jnp.float32, -mu_range, mu_range)
    weight_sigma = jnp.full((out_features, in_features), sigma_init, jnp.float32)
    bias_mu = jax.random.uniform(
        k_bmu, (out_features,), jnp.float32, -mu_range, mu_range)
    bias_sigma = jnp.full((out_features,), sigma_init, jnp.float32)

    # Factorized noise (torch stores weight_epsilon = outer(eps_out, eps_in),
    # bias_epsilon = eps_out; we keep the factors and reconstruct in the ref).
    eps_in = _scale_noise(k_ein, in_features)
    eps_out = _scale_noise(k_eout, out_features)

    return dict(weight_mu=weight_mu, weight_sigma=weight_sigma,
                bias_mu=bias_mu, bias_sigma=bias_sigma,
                eps_in=eps_in, eps_out=eps_out)


def _reference(x, p, training):
    if training:
        weight_epsilon = jnp.outer(p["eps_out"], p["eps_in"])   # eps_out.ger(eps_in)
        w = p["weight_mu"] + p["weight_sigma"] * weight_epsilon
        b = p["bias_mu"] + p["bias_sigma"] * p["eps_out"]
    else:
        w = p["weight_mu"]
        b = p["bias_mu"]
    return x @ w.T + b


if __name__ == "__main__":
    key = jax.random.PRNGKey(0)
    k1, k2, kx1, kx2 = jax.random.split(key, 4)

    # ---- layer 1: lane-aligned shapes, single-K fast path, 2 parallel N tiles
    B, In, Out = 8, 256, 512
    params = init_noisy_linear(k1, In, Out)
    x = jax.random.normal(kx1, (B, In), dtype=jnp.float32)

    # f32 weights: exact check of the factorized-noise algebra.
    prep_f32 = prepare_noisy_linear(params, weight_dtype=jnp.float32)
    y = noisy_linear(x, prep_f32, training=True)
    jax.block_until_ready(y)
    assert y.shape == (B, Out)
    assert jnp.allclose(y, _reference(x, params, True), atol=1e-4, rtol=1e-4)

    # bf16 weights in HBM (halved weight traffic), f32 accumulation.
    prep_bf16 = prepare_noisy_linear(params, weight_dtype=jnp.bfloat16)
    y_bf = noisy_linear(x, prep_bf16, training=True)
    jax.block_until_ready(y_bf)
    assert jnp.allclose(y_bf, _reference(x, params, True), atol=3e-2, rtol=3e-2)

    # Eval path: only mu weight / bias are streamed.
    y_eval = noisy_linear(x, prep_bf16, training=False)
    jax.block_until_ready(y_eval)
    assert jnp.allclose(y_eval, _reference(x, params, False), atol=3e-2, rtol=3e-2)

    # ---- layer 2: ragged shapes + multi-step K accumulation path ----
    B2, In2, Out2 = 13, 300, 200
    params2 = init_noisy_linear(k2, In2, Out2)
    x2 = jax.random.normal(kx2, (B2, In2), dtype=jnp.float32)
    prep2 = prepare_noisy_linear(params2, weight_dtype=jnp.float32, max_tk=128)
    y2 = noisy_linear(x2, prep2, training=True)
    jax.block_until_ready(y2)
    assert y2.shape == (B2, Out2)
    assert jnp.allclose(y2, _reference(x2, params2, True), atol=1e-4, rtol=1e-4)

    print("KERNEL_OK")
</pallas_src>

<mosaic_0001>
module attributes {stable_mosaic.version = 11 : i64} {
  func.func @_train_fast_kernel(%arg0: i32, %arg1: i32, %arg2: memref<8x256xf32, #tpu.memory_space<vmem>>, %arg3: memref<256x256xf32, #tpu.memory_space<vmem>>, %arg4: memref<256x256xf32, #tpu.memory_space<vmem>>, %arg5: memref<1x256xf32, #tpu.memory_space<vmem>>, %arg6: memref<1x256xf32, #tpu.memory_space<vmem>>, %arg7: memref<1x256xf32, #tpu.memory_space<vmem>>, %arg8: memref<1x256xf32, #tpu.memory_space<vmem>>, %arg9: memref<8x256xf32, #tpu.memory_space<vmem>>) attributes {dimension_semantics = [#tpu.dimension_semantics<parallel>, #tpu.dimension_semantics<parallel>], iteration_bounds = array<i64: 1, 2>, scalar_prefetch = 0 : i64, scratch_operands = 0 : i64, tpu.core_type = #tpu.core_type<tc>, window_params = [{transform_indices = @transform_0, window_bounds = array<i64: 8, 256>}, {transform_indices = @transform_1, window_bounds = array<i64: 256, 256>}, {transform_indices = @transform_2, window_bounds = array<i64: 256, 256>}, {pipeline_mode = #tpu.pipeline_mode<synchronous>, transform_indices = @transform_3, window_bounds = array<i64: 1, 256>}, {transform_indices = @transform_4, window_bounds = array<i64: 1, 256>}, {transform_indices = @transform_5, window_bounds = array<i64: 1, 256>}, {transform_indices = @transform_6, window_bounds = array<i64: 1, 256>}, {transform_indices = @transform_7, window_bounds = array<i64: 8, 256>}]} {
    %c0 = arith.constant 0 : index
    %c0_0 = arith.constant 0 : index
    %0 = vector.load %arg2[%c0, %c0_0] : memref<8x256xf32, #tpu.memory_space<vmem>>, vector<8x256xf32>
    %c0_1 = arith.constant 0 : index
    %c0_2 = arith.constant 0 : index
    %1 = vector.load %arg5[%c0_1, %c0_2] : memref<1x256xf32, #tpu.memory_space<vmem>>, vector<1x256xf32>
    %2 = vector.broadcast %1 : vector<1x256xf32> to vector<8x256xf32>
    %3 = arith.mulf %0, %2 : vector<8x256xf32>
    %c0_3 = arith.constant 0 : index
    %c0_4 = arith.constant 0 : index
    %4 = vector.load %arg3[%c0_3, %c0_4] : memref<256x256xf32, #tpu.memory_space<vmem>>, vector<256x256xf32>
    %cst = arith.constant dense<0.000000e+00> : vector<8x256xf32>
    %5 = tpu.matmul %0, %4, %cst {dimension_numbers = #tpu.dot_dimension_numbers<[1], [1], [0], [0], [0, 0, 1, 0], [], []>} : vector<8x256xf32>, vector<256x256xf32>, vector<8x256xf32> -> vector<8x256xf32>
    %c0_5 = arith.constant 0 : index
    %c0_6 = arith.constant 0 : index
    %6 = vector.load %arg4[%c0_5, %c0_6] : memref<256x256xf32, #tpu.memory_space<vmem>>, vector<256x256xf32>
    %cst_7 = arith.constant dense<0.000000e+00> : vector<8x256xf32>
    %7 = tpu.matmul %3, %6, %cst_7 {dimension_numbers = #tpu.dot_dimension_numbers<[1], [1], [0], [0], [0, 0, 1, 0], [], []>} : vector<8x256xf32>, vector<256x256xf32>, vector<8x256xf32> -> vector<8x256xf32>
    %c0_8 = arith.constant 0 : index
    %c0_9 = arith.constant 0 : index
    %8 = vector.load %arg7[%c0_8, %c0_9] : memref<1x256xf32, #tpu.memory_space<vmem>>, vector<1x256xf32>
    %c0_10 = arith.constant 0 : index
    %c0_11 = arith.constant 0 : index
    %9 = vector.load %arg8[%c0_10, %c0_11] : memref<1x256xf32, #tpu.memory_space<vmem>>, vector<1x256xf32>
    %c0_12 = arith.constant 0 : index
    %c0_13 = arith.constant 0 : index
    %10 = vector.load %arg6[%c0_12, %c0_13] : memref<1x256xf32, #tpu.memory_space<vmem>>, vector<1x256xf32>
    %11 = arith.mulf %9, %10 : vector<1x256xf32>
    %12 = arith.addf %8, %11 : vector<1x256xf32>
    %c0_14 = arith.constant 0 : index
    %c0_15 = arith.constant 0 : index
    %13 = vector.load %arg6[%c0_14, %c0_15] : memref<1x256xf32, #tpu.memory_space<vmem>>, vector<1x256xf32>
    %14 = vector.broadcast %13 : vector<1x256xf32> to vector<8x256xf32>
    %15 = arith.mulf %7, %14 : vector<8x256xf32>
    %16 = arith.addf %5, %15 : vector<8x256xf32>
    %17 = vector.broadcast %12 : vector<1x256xf32> to vector<8x256xf32>
    %18 = arith.addf %16, %17 : vector<8x256xf32>
    %c0_16 = arith.constant 0 : index
    %c0_17 = arith.constant 0 : index
    %19 = vector.load %arg9[%c0_16, %c0_17] : memref<8x256xf32, #tpu.memory_space<vmem>>, vector<8x256xf32>
    tpu.vector_store %arg9[%c0_16, %c0_17], %18 {strides = array<i32>} : memref<8x256xf32, #tpu.memory_space<vmem>>, vector<8x256xf32>,
    return
  }
  func.func @transform_0(%arg0: i32, %arg1: i32) -> (i32, i32) {
    %c0_i32 = arith.constant 0 : i32
    %c0_i32_0 = arith.constant 0 : i32
    return %arg0, %c0_i32 : i32, i32
  }
  func.func @transform_1(%arg0: i32, %arg1: i32) -> (i32, i32) {
    %c0_i32 = arith.constant 0 : i32
    %c0_i32_0 = arith.constant 0 : i32
    return %arg1, %c0_i32 : i32, i32
  }
  func.func @transform_2(%arg0: i32, %arg1: i32) -> (i32, i32) {
    %c0_i32 = arith.constant 0 : i32
    %c0_i32_0 = arith.constant 0 : i32
    return %arg1, %c0_i32 : i32, i32
  }
  func.func @transform_3(%arg0: i32, %arg1: i32) -> (i32, i32) {
    %c0_i32 = arith.constant 0 : i32
    %c0_i32_0 = arith.constant 0 : i32
    %c0_i32_1 = arith.constant 0 : i32
    return %c0_i32, %c0_i32_0 : i32, i32
  }
  func.func @transform_4(%arg0: i32, %arg1: i32) -> (i32, i32) {
    %c0_i32 = arith.constant 0 : i32
    %c0_i32_0 = arith.constant 0 : i32
    return %c0_i32, %arg1 : i32, i32
  }
  func.func @transform_5(%arg0: i32, %arg1: i32) -> (i32, i32) {
    %c0_i32 = arith.constant 0 : i32
    %c0_i32_0 = arith.constant 0 : i32
    return %c0_i32, %arg1 : i32, i32
  }
  func.func @transform_6(%arg0: i32, %arg1: i32) -> (i32, i32) {
    %c0_i32 = arith.constant 0 : i32
    %c0_i32_0 = arith.constant 0 : i32
    return %c0_i32, %arg1 : i32, i32
  }
  func.func @transform_7(%arg0: i32, %arg1: i32) -> (i32, i32) {
    %c0_i32 = arith.constant 0 : i32
    return %arg0, %arg1 : i32, i32
  }
}

</mosaic_0001>

<bundles_post_ra>
// kernel: tpu_custom_call.1
= control target key start
LH: loop header
LB: loop body
LE: loop exit
PB: predicated region body
PF: predicated region fallthrough
CT: control target
= control target key end

     0   :  { %s1761_s0 = inlined_call_operand.hbm [shape: f32[8,256], index: 0, kind: input, shape index: {}]   ;;  %s1762_s1 = inlined_call_operand.hbm [shape: f32[512,256], index: 1, kind: input, shape index: {}]   ;;  %s1763_s2 = inlined_call_operand.hbm [shape: f32[512,256], index: 2, kind: input, shape index: {}]   ;;  %s1764_s3 = inlined_call_operand.hbm [shape: f32[1,256], index: 3, kind: input, shape index: {}]   ;;  %s1765_s4 = inlined_call_operand.vmem [shape: f32[1,512], index: 4, kind: input, shape index: {}]   ;;  %s1766_s5 = inlined_call_operand.vmem [shape: f32[1,512], index: 5, kind: input, shape index: {}]   ;;  %s1767_s6 = inlined_call_operand.hbm [shape: f32[1,512], index: 6, kind: input, shape index: {}]   ;;  %s1768_s7 = inlined_call_operand.hbm [shape: f32[8,512], index: 7, kind: output, shape index: {}]  }
   0x1   :  { %1776 = sst [smem:[#allocation21_spill]] %s1761_s0 }
   0x2   :  { %1777 = sst [smem:[#allocation22_spill]] %s1762_s1 }
   0x3   :  { %1778 = sst [smem:[#allocation23_spill]] %s1763_s2 }
   0x4   :  { %1779 = sst [smem:[#allocation24_spill]] %s1768_s7 }
   0x5   :  { %12 = vsyncpa [#allocation3], 0 }
   0x6   :  { %13 = vsyncpa [#allocation6], 0 }
   0x7   :  { %15 = vsyncpa [#allocation6 + $0x1], 0 }
   0x8   :  { %16 = vsyncpa [#allocation9], 0 }
   0x9   :  { %17 = vsyncpa [#allocation4], 0 }
   0xa   :  { %19 = vsyncpa [#allocation4 + $0x1], 0  ;;  %s1370_s24 = smov 0   ;;  %s1372_s25 = smov 0  }
   0xb   :  { %s1374_s26 = smov 0   ;;  %s1376_s27 = smov 0  }
   0xc   :  { %s1378_s28 = smov 0   ;;  %s1380_s29 = smov 0  }
   0xd LB: > { %1780 = sst [smem:[#allocation17_spill]] %s1300_s24  ;;  %s1401_s30 = sadd.s32 4294967295, %s1320_s29   ;;  %s1320_s29 = sphi %s1380_s29, %s25_s29   ;;  %s1316_s28 = sphi %s1378_s28, %s1813_s28   ;;  %s1312_s27 = sphi %s1376_s27, %s1812_s27   ;;  %s1308_s26 = sphi %s1374_s26, %s1811_s26   ;;  %s1304_s25 = sphi %s1372_s25, %s1810_s25   ;;  %s1300_s24 = sphi %s1370_s24, %s1809_s24  }
   0xe   : > { %s961_s8 = sadd.s32 4294967294, %s1320_s29   ;;  %s70_s9 = sadd.s32 1, %s1308_s26 }
   0xf   : > { %p77_p0 = scmp.ne.s32.totalorder %s1308_s26, %s1304_s25  ;;  %p78_p1 = scmp.eq.s32.totalorder %s1320_s29, 0 }
  0x10   : > { %p83_p2 = scmp.ne.s32.totalorder %s1304_s25, %s1300_s24  ;;  %p1775_p3 = scmp.eq.s32.totalorder %s1401_s30, 0 }
  0x11   : > { %p234_p4 = scmp.eq.s32.totalorder %s1401_s30, 1  ;;  %p1412_p5 = por %p78_p1, %p77_p0 }
  0x12   : > { %p240_p6 = scmp.eq.s32.totalorder %s961_s8, 1  ;;  %p1418_p7 = por %p1775_p3, %p83_p2 }
  0x13   : > { %p1422_p8 = por %p234_p4, %p77_p0  ;;  %p962_p10 = scmp.ge.s32.totalorder %s1320_s29, 1 }
  0x14   : > { %p1426_p9 = por %p240_p6, %p83_p2  ;;  %p247_p11 = scmp.lt.s32.totalorder %s1320_s29, 3 }
  0x15   : > { %s1783_s12 = scalar_select %p1422_p8, 1, 0 }
  0x16   : > { %s1784_s13 = scalar_select %p1426_p9, 1, 0 }
  0x17   : > { %p1433_p13 = pnand %p962_p10, %p247_p11  ;;  %s1322_s15 = smov [#allocation2]  }
  0x18   : > { %1785 = sst [smem:[#allocation18_spill]] %s1784_s13  ;;  %s263_s16 = sshll.u32 %s1322_s15, 4  ;;  %s264_s16 = int_to_ptr.vmem [resolvable:$true] %s263_s16 }
  0x19   : > { %p1036_p1 = scmp.lt.s32.totalorder %s1320_s29, 2  ;;  %p1013_p0 = pneg %p1433_p13 }
  0x1a   : > { %s34_s19 = sadd.s32 1, %s1316_s28  ;;  %s1103_s21 = scalar_lea.vmem %s264_s16, 256 }
  0x1b   : > { %p1442_p4 = pnand %p1036_p1, %p1412_p5  ;;  %p1448_p2 = pnand %p1013_p0, %p1775_p3 }
  0x1c   : > { %p35_p6 = scmp.ge.s32.totalorder %s34_s19, 2  ;;  %p1104_p11 = scmp.ne.s32.totalorder %s264_s16, %s1103_s21 }
  0x1d   : > { %p1094_p10 = pneg %p1448_p2  ;;  %p1111_p12 = scmp.lt.s32.totalorder %s264_s16, %s264_s16 }
  0x1e   : > { %p1112_p9 = scmp.lt.s32.totalorder %s1103_s21, %s1103_s21 }
  0x1f   : > { %p1106_p5 = pnand %p1104_p11, %p1094_p10 }
  0x20   : > { %p1113_p8 = por %p1112_p9, %p1111_p12 }
  0x21   : > { %p1107_p1 = pneg %p1106_p5 }
  0x23   : > { %p1114_p0 = pnand %p1113_p8, %p1107_p1 }
  0x25   : > { %1117 = shalt.err (!%p1114_p0)
}
  0x26   : > { %s1789_s0 = sld [smem:[#allocation21_spill]]  ;;  %s1815_s19 = smov (%p35_p6, %s34_s19), 0 }
  0x27   : > { %1790 = sst [smem:[#allocation19_spill]] %s1815_s19  ;;  %s1773_s8 = sand.u32 1, %s1308_s26  }
  0x28   : > { %s67_s10 = ssub.s32 %s1316_s28, %s1815_s19  ;;  %s1471_s15 = sshll.u32 %s1773_s8, 9 }
  0x29   : > { %p68_p8 = scmp.eq.s32.totalorder %s67_s10, 0  ;;  %s992_s21 = sshll.u32 %s1316_s28, 13 }
  0x2a   : > { %s289_s22 = scalar_lea.vmem [#allocation5], %s1471_s15  ;;  %s1792_s1 = sld [smem:[#allocation22_spill]] }
  0x2b   : > { %s297_s23 = sshll.u32 %s289_s22, 4  ;;  %p1120_p9 = pneg %p1442_p4  ;;  %s298_s23 = int_to_ptr.vmem [resolvable:$true] %s297_s23 }
  0x2c   : > { %1016 = dma.hbm_to_vmem [thread:$0]  (!%p1448_p2), %s1789_s0, 256, %s264_s16, [#allocation3]  }
  0x2d   : > { %s1478_s20 = scalar_select %p68_p8, %s1308_s26, %s70_s9  }
  0x2e   : > { %s1793_s0 = sand.u32 1, %s1320_s29   ;;  %s1131_s8 = scalar_lea.vmem %s298_s23, 8192 }
  0x2f   : > { %1791 = sst [smem:[#allocation20_spill]] %s1478_s20  ;;  %s1485_s7 = scalar_lea.sflag [#allocation6], %s1793_s0 }
  0x30   : > { %s296_s16 = scalar_lea.hbm %s1792_s1, %s992_s21  ;;  %p1132_p12 = scmp.ne.s32.totalorder %s298_s23, %s1131_s8 }
  0x31   : > { %s1323_s10 = smov [#allocation5]  }
  0x32   : > { %p1134_p6 = pnand %p1132_p12, %p1120_p9  ;;  %s1136_s22 = sshll.u32 %s1323_s10, 4  ;;  %s1137_s22 = int_to_ptr.vmem [resolvable:$false] %s1136_s22 }
  0x33   : > { %s1138_s9 = scalar_lea.vmem %s1137_s22, 16384  ;;  %p1139_p5 = scmp.lt.s32.totalorder %s298_s23, %s1137_s22 }
  0x34   : > { %p1135_p11 = pneg %p1134_p6  ;;  %p1140_p1 = scmp.lt.s32.totalorder %s1138_s9, %s1131_s8 }
  0x36   : > { %p1141_p0 = por %p1140_p1, %p1139_p5 }
  0x38   : > { %p1142_p8 = pnand %p1141_p0, %p1135_p11 }
  0x3a   : > { %1145 = shalt.err (!%p1142_p8)
}
  0x3b   : > { %s1324_s24 = smov 256   ;;  %s1325_s0 = smov 16  }
  0x3c   : > { %1023 = dma.hbm_to_vmem [thread:$0]  (!%p1442_p4), %s296_s16, 8192, %s298_s23, %s1485_s7, %s1324_s24, %s1324_s24, %s1325_s0  }
  0x3d   : > { %s1794_s2 = sld [smem:[#allocation23_spill]]  ;;  %s311_s8 = scalar_lea.vmem [#allocation7], %s1471_s15 }
  0x3e   : > { %s319_s22 = sshll.u32 %s311_s8, 4  ;;  %s1326_s9 = smov [#allocation8]   ;;  %s1504_s22 = int_to_ptr.vmem [resolvable:$true] %s319_s22 }
  0x3f   : > { %s274_s19 = sshll.u32 %s1326_s9, 4  ;;  %s275_s19 = int_to_ptr.vmem [resolvable:$true] %s274_s19 }
  0x40   : > { %s1157_s20 = scalar_lea.vmem %s275_s19, 32  ;;  %p1165_p5 = scmp.lt.s32.totalorder %s275_s19, %s275_s19 }
  0x41   : > { %p1158_p12 = scmp.ne.s32.totalorder %s275_s19, %s1157_s20  ;;  %p1166_p1 = scmp.lt.s32.totalorder %s1157_s20, %s1157_s20 }
  0x43   : > { %s1501_s1 = scalar_lea.hbm %s1794_s2, %s992_s21  ;;  %p1160_p6 = pnand %p1158_p12, %p1094_p10 }
  0x44   : > { %p1167_p0 = por %p1166_p1, %p1165_p5 }
  0x45   : > { %p1161_p11 = pneg %p1160_p6 }
  0x47   : > { %p1168_p8 = pnand %p1167_p0, %p1161_p11 }
  0x49   : > { %1171 = shalt.err (!%p1168_p8)
}
  0x4a   : > { %1019 = dma.hbm_to_vmem [thread:$0]  (!%p1448_p2), %s1764_s3, 32, %s275_s19, [#allocation9]  }
  0x4b   : > { %s1185_s23 = scalar_lea.vmem %s1504_s22, 8192  ;;  %s1327_s20 = smov [#allocation7]  }
  0x4c   : > { %p1186_p3 = scmp.ne.s32.totalorder %s1504_s22, %s1185_s23  ;;  %s1190_s16 = sshll.u32 %s1327_s20, 4  ;;  %s1191_s16 = int_to_ptr.vmem [resolvable:$false] %s1190_s16 }
  0x4d   : > { %s1192_s13 = scalar_lea.vmem %s1191_s16, 16384  ;;  %p1193_p6 = scmp.lt.s32.totalorder %s1504_s22, %s1191_s16 }
  0x4e   : > { %p1188_p10 = pnand %p1186_p3, %p1120_p9  ;;  %p1194_p11 = scmp.lt.s32.totalorder %s1192_s13, %s1185_s23 }
  0x50   : > { %p1189_p12 = pneg %p1188_p10  ;;  %p1195_p5 = por %p1194_p11, %p1193_p6 }
  0x52   : > { %p1196_p1 = pnand %p1195_p5, %p1189_p12 }
  0x54   : > { %1199 = shalt.err (!%p1196_p1)
}
  0x55   : > { %1026 = dma.hbm_to_vmem [thread:$0]  (!%p1442_p4), %s1501_s1, 8192, %s1504_s22, %s1485_s7, %s1324_s24, %s1324_s24, %s1325_s0  }
  0x56   : > { %s1795_s18 = sand.u32 1, %s1308_s26   ;;  %s995_s10 = sshll.u32 %s1316_s28, 5 }
  0x57   : > { %s974_s19 = sshll.u32 %s1795_s18, 1  ;;  %s355_s15 = scalar_lea.hbm %s1767_s6, %s995_s10 }
  0x58   : > { %s349_s21 = scalar_lea.vmem [#allocation10], %s974_s19  ;;  %s1796_s20 = sand.u32 1, %s1320_s29  }
  0x59   : > { %s357_s23 = sshll.u32 %s349_s21, 4  ;;  %s346_s16 = scalar_lea.sflag [#allocation3], %s1796_s20  ;;  %s358_s23 = int_to_ptr.vmem [resolvable:$true] %s357_s23 }
  0x5a   : > { %s1213_s13 = scalar_lea.vmem %s358_s23, 32  ;;  %s1328_s2 = smov [#allocation10]  }
  0x5b   : > { %p1214_p3 = scmp.ne.s32.totalorder %s358_s23, %s1213_s13  ;;  %s1218_s1 = sshll.u32 %s1328_s2, 4  ;;  %s1219_s1 = int_to_ptr.vmem [resolvable:$false] %s1218_s1 }
  0x5c   : > { %s1220_s7 = scalar_lea.vmem %s1219_s1, 64  ;;  %p1221_p8 = scmp.lt.s32.totalorder %s358_s23, %s1219_s1 }
  0x5d   : > { %p1216_p2 = pnand %p1214_p3, %p1120_p9  ;;  %p1222_p10 = scmp.lt.s32.totalorder %s1220_s7, %s1213_s13 }
  0x5f   : > { %p1217_p0 = pneg %p1216_p2  ;;  %p1223_p12 = por %p1222_p10, %p1221_p8 }
  0x61   : > { %p1224_p6 = pnand %p1223_p12, %p1217_p0 }
  0x63   : > { %1227 = shalt.err (!%p1224_p6)
}
  0x64   : > { %1029 = dma.hbm_to_vmem [thread:$0]  (!%p1442_p4), %s355_s15, 32, %s358_s23, %s346_s16  }
  0x65   : > { %366 = sbr.rel (%p1433_p13) target bundleno = 460 (0x1cc), region = 48  ;;  %p1797_p11 = scmp.eq.s32.totalorder (!%p1433_p13), %s1401_s30, 0 }
  0x6a   : > { %1279 = dma.done.wait (%p1797_p11), [#allocation3], 256   ;;  %p1798_p9 = pmov %p1797_p11 }
  0x6b   : > { %s372_s2 = sand.u32 1, %s1401_s30   ;;  %s1549_s24 = sand.u32 1, %s1304_s25  }
  0x6c   : > { %1281 = vsyncadd (%p1798_p9), [#allocation3], 4294967040  ;;  %s979_s0 = sshll.u32 %s1549_s24, 9  ;;  %s373_s22 = scalar_lea.sflag [#allocation6], %s372_s2 }
  0x6d   : > { %s1552_s17 = scalar_lea.vmem [#allocation5], %s979_s0 }
  0x6e   : > { %1283 = dma.done.wait (%p1418_p7), %s373_s22, 16384  }
  0x6f   : > { %1285 = vsyncadd (%p1418_p7), %s373_s22, 4294950912  ;;  %s1558_s14 = scalar_lea.vmem [#allocation7], %s979_s0  ;;  %p1799_p13 = pmov %p1798_p9 }
  0x70   : > { %p1800_p4 = pmov %p1798_p9 }
  0x71   : > { %1287 = dma.done.wait (%p1799_p13), [#allocation9], 32  }
  0x72   : > { %1289 = vsyncadd (%p1800_p4), [#allocation9], 4294967264  ;;  %s982_s18 = sshll.u32 %s1549_s24, 1  ;;  %s395_s19 = scalar_lea.sflag [#allocation3], %s372_s2 }
  0x73   : > { %s1565_s10 = scalar_lea.vmem [#allocation10], %s982_s18 }
  0x74   : > { %1291 = dma.done.wait (%p1418_p7), %s395_s19, 32  }
  0x75   : > { %1293 = vsyncadd (%p1418_p7), %s395_s19, 4294967264  ;;  %v572_v0 = vld [vmem:[%s1558_s14 + $0xf8] sm:$0xff]  ;;  %v571_v2 = vld [vmem:[%s1558_s14 + $0xf0] sm:$0xff]  ;;  %v465_v38 = vlaneseq  ;;  %s984_s30 = sshll.u32 %s1312_s27, 1  ;;  %s983_s20 = sshll.u32 %s1549_s24, 4 }
  0x76   : > { %v508_v1 = vld [vmem:[%s1552_s17 + $0xf8] sm:$0xff]  ;;  %605 = vmatprep.subr.mxu0 %v572_v0  ;;  %v507_v3 = vld [vmem:[%s1552_s17 + $0xf0] sm:$0xff]  ;;  %v570_v4 = vld [vmem:[%s1558_s14 + $0xe8] sm:$0xff]  ;;  %p450_p7 = scmp.lt.s32.totalorder %s984_s30, 3  ;;  %s996_s16 = sshll.u32 %s1312_s27, 8 }
  0x77   : > { %694 = vmatprep.subr.mxu1 %v508_v1  ;;  %v506_v5 = vld [vmem:[%s1552_s17 + $0xe8] sm:$0xff]  ;;  %606 = vmatpush1.xpose.msra.mxu0 %v571_v2  ;;  %v569_v6 = vld [vmem:[%s1558_s14 + $0xe0] sm:$0xff]  ;;  %v568_v8 = vld [vmem:[%s1558_s14 + $0xd8] sm:$0xff]  ;;  %v1613_v43 = vshrl.u32 %v465_v38, 7  ;;  %s446_s13 = scalar_lea.vmem [#allocation11], %s983_s20  ;;  %s1801_s0 = sld [smem:[#allocation24_spill]] }
  0x78   : > { %695 = vmatpush1.xpose.msra.mxu1 %v507_v3  ;;  %607 = vmatprep.subr.mxu0 %v570_v4  ;;  %v505_v7 = vld [vmem:[%s1552_s17 + $0xe0] sm:$0xff]  ;;  %v504_v9 = vld [vmem:[%s1552_s17 + $0xd8] sm:$0xff]  ;;  %v567_v10 = vld [vmem:[%s1558_s14 + $0xd0] sm:$0xff]  ;;  %s1817_s30 = smov (!%p450_p7, %s984_s30), 3  ;;  %s797_s1 = sshll.u32 %s446_s13, 4  ;;  %s798_s1 = int_to_ptr.vmem [resolvable:$true] %s797_s1 }
  0x79   : > { %696 = vmatprep.subr.mxu1 %v506_v5  ;;  %v503_v11 = vld [vmem:[%s1552_s17 + $0xd0] sm:$0xff]  ;;  %v566_v12 = vld [vmem:[%s1558_s14 + $0xc8] sm:$0xff]  ;;  %v565_v14 = vld [vmem:[%s1558_s14 + $0xc0] sm:$0xff]  ;;  %v1620_v48 = vsub.s32 1, %v1613_v43  ;;  %s452_s9 = scalar_lea.vmem %s1765_s4, %s1817_s30  ;;  %s457_s23 = scalar_lea.vmem %s1766_s5, %s1817_s30 }
  0x7a   : > { %v502_v13 = vld [vmem:[%s1552_s17 + $0xc8] sm:$0xff]  ;;  %v501_v15 = vld [vmem:[%s1552_s17 + $0xc0] sm:$0xff]  ;;  %v564_v16 = vld [vmem:[%s1558_s14 + $0xb8] sm:$0xff]  ;;  %p1802_p1 = scmp.ne.s32.totalorder %s1783_s12, 0  ;;  %s1329_s18 = smov [#allocation11]  }
  0x7b   : > { %608 = vmatpush1.xpose.msra.mxu0 %v569_v6  ;;  %v500_v17 = vld [vmem:[%s1552_s17 + $0xb8] sm:$0xff]  ;;  %v563_v18 = vld [vmem:[%s1558_s14 + $0xb0] sm:$0xff]  ;;  %v562_v20 = vld [vmem:[%s1558_s14 + $0xa8] sm:$0xff]  ;;  %s1232_s27 = sshll.u32 %s1329_s18, 4  ;;  %s1233_s27 = int_to_ptr.vmem [resolvable:$false] %s1232_s27 }
  0x7c   : > { %697 = vmatpush1.xpose.msra.mxu1 %v505_v7  ;;  %609 = vmatprep.subr.mxu0 %v568_v8  ;;  %v499_v19 = vld [vmem:[%s1552_s17 + $0xb0] sm:$0xff]  ;;  %v498_v21 = vld [vmem:[%s1552_s17 + $0xa8] sm:$0xff]  ;;  %v561_v22 = vld [vmem:[%s1558_s14 + $0xa0] sm:$0xff]  ;;  %s1234_s19 = scalar_lea.vmem %s1233_s27, 512  ;;  %p1235_p0 = scmp.lt.s32.totalorder %s798_s1, %s1233_s27 }
  0x7d   : > { %698 = vmatprep.subr.mxu1 %v504_v9  ;;  %v497_v23 = vld [vmem:[%s1552_s17 + $0xa0] sm:$0xff]  ;;  %v560_v24 = vld [vmem:[%s1558_s14 + $0x98] sm:$0xff]  ;;  %v559_v26 = vld [vmem:[%s1558_s14 + $0x90] sm:$0xff]  ;;  %s795_s22 = scalar_lea.hbm %s1801_s0, %s996_s16 }
  0x7e   : > { %v496_v25 = vld [vmem:[%s1552_s17 + $0x98] sm:$0xff]  ;;  %v495_v27 = vld [vmem:[%s1552_s17 + $0x90] sm:$0xff]  ;;  %v558_v28 = vld [vmem:[%s1558_s14 + $0x88] sm:$0xff] }
  0x7f   : > { %610 = vmatpush1.xpose.msra.mxu0 %v567_v10  ;;  %v494_v29 = vld [vmem:[%s1552_s17 + $0x88] sm:$0xff]  ;;  %v557_v30 = vld [vmem:[%s1558_s14 + $0x80] sm:$0xff]  ;;  %v556_v32 = vld [vmem:[%s1558_s14 + $0x78] sm:$0xff] }
  0x80   : > { %699 = vmatpush1.xpose.msra.mxu1 %v503_v11  ;;  %611 = vmatprep.subr.mxu0 %v566_v12  ;;  %v493_v31 = vld [vmem:[%s1552_s17 + $0x80] sm:$0xff]  ;;  %v492_v33 = vld [vmem:[%s1552_s17 + $0x78] sm:$0xff]  ;;  %v555_v34 = vld [vmem:[%s1558_s14 + $0x70] sm:$0xff] }
  0x81   : > { %700 = vmatprep.subr.mxu1 %v502_v13  ;;  %v491_v35 = vld [vmem:[%s1552_s17 + $0x70] sm:$0xff]  ;;  %v554_v36 = vld [vmem:[%s1558_s14 + $0x68] sm:$0xff]  ;;  %v553_v39 = vld [vmem:[%s1558_s14 + $0x60] sm:$0xff] }
  0x82   : > { %v490_v37 = vld [vmem:[%s1552_s17 + $0x68] sm:$0xff]  ;;  %v489_v40 = vld [vmem:[%s1552_s17 + $0x60] sm:$0xff]  ;;  %v552_v41 = vld [vmem:[%s1558_s14 + $0x58] sm:$0xff] }
  0x83   : > { %612 = vmatpush1.xpose.msra.mxu0 %v565_v14  ;;  %v488_v42 = vld [vmem:[%s1552_s17 + $0x58] sm:$0xff]  ;;  %v551_v44 = vld [vmem:[%s1558_s14 + $0x50] sm:$0xff]  ;;  %v550_v46 = vld [vmem:[%s1558_s14 + $0x48] sm:$0xff] }
  0x84   : > { %701 = vmatpush1.xpose.msra.mxu1 %v501_v15  ;;  %613 = vmatprep.subr.mxu0 %v564_v16  ;;  %v487_v45 = vld [vmem:[%s1552_s17 + $0x50] sm:$0xff]  ;;  %v486_v47 = vld [vmem:[%s1552_s17 + $0x48] sm:$0xff]  ;;  %v549_v49 = vld [vmem:[%s1558_s14 + $0x40] sm:$0xff] }
  0x85   : > { %702 = vmatprep.subr.mxu1 %v500_v17  ;;  %v485_v50 = vld [vmem:[%s1552_s17 + $0x40] sm:$0xff]  ;;  %v462_v51 = vld [vmem:[#allocation2 + $0x8] sm:$0xff]  ;;  %v547_v57 = vld [vmem:[%s1558_s14 + $0x30] sm:$0xff] }
  0x86   : > { %v1624_v52 = vld [vmem:[#allocation8] sm:$0x3]  ;;  %v548_v53 = vld [vmem:[%s1558_s14 + $0x38] sm:$0xff]  ;;  %758 = vmatprep.mubr.f32.mxu1 %v462_v51  ;;  %v483_v58 = vld [vmem:[%s1552_s17 + $0x30] sm:$0xff] }
  0x87   : > { %614 = vmatpush1.xpose.msra.mxu0 %v563_v18  ;;  %v484_v54 = vld [vmem:[%s1552_s17 + $0x38] sm:$0xff]  ;;  %v472_v55 = vrot.slane %v1624_v52, %v1620_v48  ;;  %v546_v59 = vld [vmem:[%s1558_s14 + $0x28] sm:$0xff]  ;;  %v545_v61 = vld [vmem:[%s1558_s14 + $0x20] sm:$0xff] }
  0x88   : > { %703 = vmatpush1.xpose.msra.mxu1 %v499_v19  ;;  %615 = vmatprep.subr.mxu0 %v562_v20  ;;  %v482_v60 = vld [vmem:[%s1552_s17 + $0x28] sm:$0xff]  ;;  %v481_v62 = vld [vmem:[%s1552_s17 + $0x20] sm:$0xff]  ;;  %v544_v63 = vld [vmem:[%s1558_s14 + $0x18] sm:$0xff] }
  0x89   : > { %704 = vmatprep.subr.mxu1 %v498_v21  ;;  %v476_v56 = vmul.f32 %v472_v55, %v462_v51  ;;  %v480_v0 = vld [vmem:[%s1552_s17 + $0x18] sm:$0xff]  ;;  %v543_v1 = vld [vmem:[%s1558_s14 + $0x10] sm:$0xff]  ;;  %v542_v3 = vld [vmem:[%s1558_s14 + $0x8] sm:$0xff] }
  0x8a   : > { %v479_v2 = vld [vmem:[%s1552_s17 + $0x10] sm:$0xff]  ;;  %v478_v4 = vld [vmem:[%s1552_s17 + $0x8] sm:$0xff]  ;;  %v541_v5 = vld [vmem:[%s1558_s14] sm:$0xff] }
  0x8b   : > { %616 = vmatpush1.xpose.msra.mxu0 %v561_v22  ;;  %669 = vmatprep.mubr.f32.mxu0 %v476_v56  ;;  %v477_v6 = vld [vmem:[%s1552_s17] sm:$0xff]  ;;  %v604_v7 = vld [vmem:[%s1558_s14 + $0x1f8] sm:$0xff]  ;;  %v603_v9 = vld [vmem:[%s1558_s14 + $0x1f0] sm:$0xff] }
  0x8c   : > { %705 = vmatpush1.xpose.msra.mxu1 %v497_v23  ;;  %617 = vmatprep.subr.mxu0 %v560_v24  ;;  %v540_v8 = vld [vmem:[%s1552_s17 + $0x1f8] sm:$0xff]  ;;  %v539_v10 = vld [vmem:[%s1552_s17 + $0x1f0] sm:$0xff]  ;;  %v602_v11 = vld [vmem:[%s1558_s14 + $0x1e8] sm:$0xff] }
  0x8d   : > { %706 = vmatprep.subr.mxu1 %v496_v25  ;;  %v538_v12 = vld [vmem:[%s1552_s17 + $0x1e8] sm:$0xff]  ;;  %v601_v13 = vld [vmem:[%s1558_s14 + $0x1e0] sm:$0xff]  ;;  %v600_v15 = vld [vmem:[%s1558_s14 + $0x1d8] sm:$0xff] }
  0x8e   : > { %v537_v14 = vld [vmem:[%s1552_s17 + $0x1e0] sm:$0xff]  ;;  %v536_v16 = vld [vmem:[%s1552_s17 + $0x1d8] sm:$0xff]  ;;  %v599_v17 = vld [vmem:[%s1558_s14 + $0x1d0] sm:$0xff] }
  0x8f   : > { %618 = vmatpush1.xpose.msra.mxu0 %v559_v26  ;;  %v535_v18 = vld [vmem:[%s1552_s17 + $0x1d0] sm:$0xff]  ;;  %v598_v19 = vld [vmem:[%s1558_s14 + $0x1c8] sm:$0xff]  ;;  %v597_v21 = vld [vmem:[%s1558_s14 + $0x1c0] sm:$0xff] }
  0x90   : > { %707 = vmatpush1.xpose.msra.mxu1 %v495_v27  ;;  %619 = vmatprep.subr.mxu0 %v558_v28  ;;  %v534_v20 = vld [vmem:[%s1552_s17 + $0x1c8] sm:$0xff]  ;;  %v533_v22 = vld [vmem:[%s1552_s17 + $0x1c0] sm:$0xff]  ;;  %v596_v23 = vld [vmem:[%s1558_s14 + $0x1b8] sm:$0xff] }
  0x91   : > { %708 = vmatprep.subr.mxu1 %v494_v29  ;;  %v532_v24 = vld [vmem:[%s1552_s17 + $0x1b8] sm:$0xff]  ;;  %v595_v25 = vld [vmem:[%s1558_s14 + $0x1b0] sm:$0xff]  ;;  %v594_v27 = vld [vmem:[%s1558_s14 + $0x1a8] sm:$0xff] }
  0x92   : > { %v531_v26 = vld [vmem:[%s1552_s17 + $0x1b0] sm:$0xff]  ;;  %v530_v28 = vld [vmem:[%s1552_s17 + $0x1a8] sm:$0xff]  ;;  %v593_v29 = vld [vmem:[%s1558_s14 + $0x1a0] sm:$0xff] }
  0x93   : > { %620 = vmatpush1.xpose.msra.mxu0 %v557_v30  ;;  %v529_v30 = vld [vmem:[%s1552_s17 + $0x1a0] sm:$0xff]  ;;  %v583_v51 = vld [vmem:[%s1558_s14 + $0x150] sm:$0xff]  ;;  %v518_v55 = vld [vmem:[%s1552_s17 + $0x148] sm:$0xff] }
  0x94   : > { %709 = vmatpush1.xpose.msra.mxu1 %v493_v31  ;;  %621 = vmatprep.subr.mxu0 %v556_v32  ;;  %v592_v31 = vld [vmem:[%s1558_s14 + $0x198] sm:$0xff]  ;;  %v525_v38 = vld [vmem:[%s1552_s17 + $0x180] sm:$0xff] }
  0x95   : > { %710 = vmatprep.subr.mxu1 %v492_v33  ;;  %v528_v32 = vld [vmem:[%s1552_s17 + $0x198] sm:$0xff]  ;;  %v591_v33 = vld [vmem:[%s1558_s14 + $0x190] sm:$0xff]  ;;  %v581_v56 = vld [vmem:[%s1558_s14 + $0x140] sm:$0xff] }
  0x97   : > { %622 = vmatpush1.xpose.msra.mxu0 %v555_v34  ;;  %v527_v34 = vld [vmem:[%s1552_s17 + $0x190] sm:$0xff] }
  0x98   : > { %711 = vmatpush1.xpose.msra.mxu1 %v491_v35  ;;  %623 = vmatprep.subr.mxu0 %v554_v36  ;;  %v590_v35 = vld [vmem:[%s1558_s14 + $0x188] sm:$0xff] }
  0x99   : > { %712 = vmatprep.subr.mxu1 %v490_v37  ;;  %v526_v36 = vld [vmem:[%s1552_s17 + $0x188] sm:$0xff]  ;;  %v589_v37 = vld [vmem:[%s1558_s14 + $0x180] sm:$0xff] }
  0x9b   : > { %624 = vmatpush1.xpose.msra.mxu0 %v553_v39  ;;  %v588_v39 = vld [vmem:[%s1558_s14 + $0x178] sm:$0xff] }
  0x9c   : > { %713 = vmatpush1.xpose.msra.mxu1 %v489_v40  ;;  %625 = vmatprep.subr.mxu0 %v552_v41  ;;  %v524_v40 = vld [vmem:[%s1552_s17 + $0x178] sm:$0xff]  ;;  %v587_v41 = vld [vmem:[%s1558_s14 + $0x170] sm:$0xff] }
  0x9d   : > { %714 = vmatprep.subr.mxu1 %v488_v42  ;;  %v523_v42 = vld [vmem:[%s1552_s17 + $0x170] sm:$0xff] }
  0x9f   : > { %626 = vmatpush1.xpose.msra.mxu0 %v551_v44  ;;  %v586_v44 = vld [vmem:[%s1558_s14 + $0x168] sm:$0xff] }
  0xa0   : > { %715 = vmatpush1.xpose.msra.mxu1 %v487_v45  ;;  %627 = vmatprep.subr.mxu0 %v550_v46  ;;  %v522_v45 = vld [vmem:[%s1552_s17 + $0x168] sm:$0xff]  ;;  %v585_v46 = vld [vmem:[%s1558_s14 + $0x160] sm:$0xff] }
  0xa1   : > { %716 = vmatprep.subr.mxu1 %v486_v47  ;;  %v521_v47 = vld [vmem:[%s1552_s17 + $0x160] sm:$0xff] }
  0xa3   : > { %628 = vmatpush1.xpose.msra.mxu0 %v549_v49  ;;  %v584_v49 = vld [vmem:[%s1558_s14 + $0x158] sm:$0xff] }
  0xa4   : > { %717 = vmatpush1.xpose.msra.mxu1 %v485_v50  ;;  %629 = vmatprep.subr.mxu0 %v548_v53  ;;  %v520_v50 = vld [vmem:[%s1552_s17 + $0x158] sm:$0xff]  ;;  %v519_v53 = vld [vmem:[%s1552_s17 + $0x150] sm:$0xff] }
  0xa5   : > { %718 = vmatprep.subr.mxu1 %v484_v54  ;;  %v582_v54 = vld [vmem:[%s1558_s14 + $0x148] sm:$0xff] }
  0xa7   : > { %630 = vmatpush1.xpose.msra.mxu0 %v547_v57  ;;  %v517_v57 = vld [vmem:[%s1552_s17 + $0x140] sm:$0xff] }
  0xa8   : > { %719 = vmatpush1.xpose.msra.mxu1 %v483_v58  ;;  %631 = vmatprep.subr.mxu0 %v546_v59  ;;  %v580_v58 = vld [vmem:[%s1558_s14 + $0x138] sm:$0xff] }
  0xa9   : > { %720 = vmatprep.subr.mxu1 %v482_v60  ;;  %v516_v59 = vld [vmem:[%s1552_s17 + $0x138] sm:$0xff]  ;;  %v579_v60 = vld [vmem:[%s1558_s14 + $0x130] sm:$0xff] }
  0xab   : > { %632 = vmatpush1.xpose.msra.mxu0 %v545_v61  ;;  %v515_v61 = vld [vmem:[%s1552_s17 + $0x130] sm:$0xff] }
  0xac   : > { %721 = vmatpush1.xpose.msra.mxu1 %v481_v62  ;;  %633 = vmatprep.subr.mxu0 %v544_v63  ;;  %v578_v62 = vld [vmem:[%s1558_s14 + $0x128] sm:$0xff] }
  0xad   : > { %722 = vmatprep.subr.mxu1 %v480_v0  ;;  %v514_v63 = vld [vmem:[%s1552_s17 + $0x128] sm:$0xff]  ;;  %v577_v0 = vld [vmem:[%s1558_s14 + $0x120] sm:$0xff] }
  0xaf   : > { %634 = vmatpush1.xpose.msra.mxu0 %v543_v1  ;;  %v513_v1 = vld [vmem:[%s1552_s17 + $0x120] sm:$0xff] }
  0xb0   : > { %723 = vmatpush1.xpose.msra.mxu1 %v479_v2  ;;  %635 = vmatprep.subr.mxu0 %v542_v3  ;;  %v576_v2 = vld [vmem:[%s1558_s14 + $0x118] sm:$0xff] }
  0xb1   : > { %724 = vmatprep.subr.mxu1 %v478_v4  ;;  %v512_v3 = vld [vmem:[%s1552_s17 + $0x118] sm:$0xff]  ;;  %v467_v4 = vsub.s32 0, %v1613_v43  ;;  %v509_v43 = vld [vmem:[%s1552_s17 + $0x100] sm:$0xff] }
  0xb3   : > { %636 = vmatpush1.xpose.msra.mxu0 %v541_v5  ;;  %v575_v5 = vld [vmem:[%s1558_s14 + $0x110] sm:$0xff] }
  0xb4   : > { %725 = vmatpush1.xpose.msra.mxu1 %v477_v6  ;;  %637 = vmatprep.subr.mxu0 %v604_v7  ;;  %v511_v6 = vld [vmem:[%s1552_s17 + $0x110] sm:$0xff]  ;;  %v574_v7 = vld [vmem:[%s1558_s14 + $0x108] sm:$0xff] }
  0xb5   : > { %726 = vmatprep.subr.mxu1 %v540_v8  ;;  %v510_v8 = vld [vmem:[%s1552_s17 + $0x108] sm:$0xff]  ;;  %s781_s17 = scalar_lea.sflag [#allocation4], %s1549_s24 }
  0xb7   : > { %638 = vmatpush2.xpose.msra.mxu0 %v603_v9  ;;  %v468_v9 = vrot.slane %v1624_v52, %v467_v4  ;;  %v677_v52 = vld [vmem:[%s1565_s10] sm:$0x3] }
  0xb8   : > { %727 = vmatpush2.xpose.msra.mxu1 %v539_v10  ;;  %639 = vmatprep.subr.mxu0 %v602_v11  ;;  %v461_v10 = vld [vmem:[#allocation2] sm:$0xff]  ;;  %v573_v11 = vld [vmem:[%s1558_s14 + $0x100] sm:$0xff]  ;;  %s1228_s14 = scalar_lea.vmem %s798_s1, 256 }
  0xb9   : > { %728 = vmatprep.subr.mxu1 %v538_v12  ;;  %v475_v12 = vmul.f32 %v468_v9, %v461_v10  ;;  %p1229_p5 = scmp.ne.s32.totalorder %s798_s1, %s1228_s14  ;;  %p1236_p8 = scmp.lt.s32.totalorder %s1234_s19, %s1228_s14 }
  0xbb   : > { %640 = vmatpush2.xpose.msra.mxu0 %v601_v13  ;;  %v678_v13 = vld [vmem:[%s452_s9] sm:$0x3]  ;;  %p1230_p3 = pnand %p1229_p5, %p1802_p1  ;;  %p1237_p10 = por %p1236_p8, %p1235_p0 }
  0xbc   : > { %729 = vmatpush2.xpose.msra.mxu1 %v537_v14  ;;  %641 = vmatprep.subr.mxu0 %v600_v15  ;;  %v679_v14 = vmul.f32 %v678_v13, %v677_v52  ;;  %v676_v15 = vld [vmem:[%s457_s23] sm:$0x3] }
  0xbd   : > { %730 = vmatprep.subr.mxu1 %v536_v16  ;;  %v685_v16 = vrot.slane %v678_v13, %v467_v4  ;;  %p1231_p2 = pneg %p1230_p3 }
  0xbf   : > { %642 = vmatpush2.xpose.msra.mxu0 %v599_v17  ;;  %v680_v17 = vadd.f32 %v679_v14, %v676_v15  ;;  %p1238_p12 = pnand %p1237_p10, %p1231_p2 }
  0xc0   : > { %731 = vmatpush2.xpose.msra.mxu1 %v535_v18  ;;  %643 = vmatprep.subr.mxu0 %v598_v19  ;;  %v689_v18 = vrot.slane %v678_v13, %v1620_v48 }
  0xc1   : > { %732 = vmatprep.subr.mxu1 %v534_v20 }
  0xc3   : > { %644 = vmatpush2.xpose.msra.mxu0 %v597_v21 }
  0xc4   : > { %733 = vmatpush2.xpose.msra.mxu1 %v533_v22  ;;  %645 = vmatprep.subr.mxu0 %v596_v23  ;;  %v769_v22 = vrot.slane %v680_v17, %v467_v4 }
  0xc5   : > { %734 = vmatprep.subr.mxu1 %v532_v24 }
  0xc7   : > { %646 = vmatpush2.xpose.msra.mxu0 %v595_v25 }
  0xc8   : > { %735 = vmatpush2.xpose.msra.mxu1 %v531_v26  ;;  %647 = vmatprep.subr.mxu0 %v594_v27  ;;  %v773_v26 = vrot.slane %v680_v17, %v1620_v48 }
  0xc9   : > { %736 = vmatprep.subr.mxu1 %v530_v28 }
  0xcb   : > { %648 = vmatpush2.xpose.msra.mxu0 %v593_v29 }
  0xcc   : > { %737 = vmatpush2.xpose.msra.mxu1 %v529_v30  ;;  %649 = vmatprep.subr.mxu0 %v592_v31 }
  0xcd   : > { %738 = vmatprep.subr.mxu1 %v528_v32 }
  0xcf   : > { %650 = vmatpush2.xpose.msra.mxu0 %v591_v33 }
  0xd0   : > { %739 = vmatpush2.xpose.msra.mxu1 %v527_v34  ;;  %651 = vmatprep.subr.mxu0 %v590_v35 }
  0xd1   : > { %740 = vmatprep.subr.mxu1 %v526_v36 }
  0xd3   : > { %652 = vmatpush2.xpose.msra.mxu0 %v589_v37 }
  0xd4   : > { %741 = vmatpush2.xpose.msra.mxu1 %v525_v38  ;;  %653 = vmatprep.subr.mxu0 %v588_v39 }
  0xd5   : > { %742 = vmatprep.subr.mxu1 %v524_v40 }
  0xd7   : > { %654 = vmatpush2.xpose.msra.mxu0 %v587_v41 }
  0xd8   : > { %743 = vmatpush2.xpose.msra.mxu1 %v523_v42  ;;  %655 = vmatprep.subr.mxu0 %v586_v44 }
  0xd9   : > { %744 = vmatprep.subr.mxu1 %v522_v45 }
  0xdb   : > { %656 = vmatpush2.xpose.msra.mxu0 %v585_v46 }
  0xdc   : > { %745 = vmatpush2.xpose.msra.mxu1 %v521_v47  ;;  %657 = vmatprep.subr.mxu0 %v584_v49 }
  0xdd   : > { %746 = vmatprep.subr.mxu1 %v520_v50 }
  0xdf   : > { %658 = vmatpush2.xpose.msra.mxu0 %v583_v51 }
  0xe0   : > { %747 = vmatpush2.xpose.msra.mxu1 %v519_v53  ;;  %659 = vmatprep.subr.mxu0 %v582_v54 }
  0xe1   : > { %748 = vmatprep.subr.mxu1 %v518_v55 }
  0xe3   : > { %660 = vmatpush2.xpose.msra.mxu0 %v581_v56 }
  0xe4   : > { %749 = vmatpush2.xpose.msra.mxu1 %v517_v57  ;;  %661 = vmatprep.subr.mxu0 %v580_v58 }
  0xe5   : > { %750 = vmatprep.subr.mxu1 %v516_v59 }
  0xe7   : > { %662 = vmatpush2.xpose.msra.mxu0 %v579_v60 }
  0xe8   : > { %751 = vmatpush2.xpose.msra.mxu1 %v515_v61  ;;  %663 = vmatprep.subr.mxu0 %v578_v62 }
  0xe9   : > { %752 = vmatprep.subr.mxu1 %v514_v63 }
  0xeb   : > { %664 = vmatpush2.xpose.msra.mxu0 %v577_v0 }
  0xec   : > { %753 = vmatpush2.xpose.msra.mxu1 %v513_v1  ;;  %665 = vmatprep.subr.mxu0 %v576_v2 }
  0xed   : > { %754 = vmatprep.subr.mxu1 %v512_v3 }
  0xef   : > { %666 = vmatpush2.xpose.msra.mxu0 %v575_v5 }
  0xf0   : > { %755 = vmatpush2.xpose.msra.mxu1 %v511_v6  ;;  %667 = vmatprep.subr.mxu0 %v574_v7 }
  0xf1   : > { %756 = vmatprep.subr.mxu1 %v510_v8 }
  0xf3   : > { %668 = vmatpush2.xpose.msra.mxu0 %v573_v11 }
  0xf4   : > { %757 = vmatpush2.xpose.msra.mxu1 %v509_v43 }
  0xf6   : > { %670 = vmatmul.mubr.f32.vlgmr.msra.gmra.mxu0 %v475_v12 }
  0xf7   : > { %759 = vmatmul.mubr.f32.vlgmr.msra.gmra.mxu1 %v461_v10 }
 0x1b6   : > { %v671_v19 = vpop.f32.mrf.mxu0 }
 0x1b7   : > { %v760_v20 = vpop.f32.mrf.mxu1  ;;  %v692_v21 = vmul.f32 %v685_v16, %v671_v19 }
 0x1b8   : > { %v673_v23 = vpop.f32.mrf.mxu0 }
 0x1b9   : > { %v761_v24 = vadd.f32 %v760_v20, %v692_v21  ;;  %v693_v25 = vmul.f32 %v689_v18, %v673_v23  ;;  %v762_v27 = vpop.f32.mrf.mxu1 }
 0x1bb   : > { %v776_v28 = vadd.f32 %v769_v22, %v761_v24  ;;  %v763_v29 = vadd.f32 %v762_v27, %v693_v25 }
 0x1bd   : > { %778 = vst [vmem:[%s446_s13] sm:$0xff] %v776_v28  ;;  %v777_v30 = vadd.f32 %v773_v26, %v763_v29 }
 0x1bf   : > { %779 = vst [vmem:[%s446_s13 + $0x8] sm:$0xff] %v777_v30 }
 0x1c0   : > { %1241 = shalt.err (!%p1238_p12)
}
 0x1c1   : > { %s1242_s10 = scalar_lea.hbm %s795_s22, 256  ;;  %s1246_s11 = scalar_lea.hbm %s1801_s0, 512 }
 0x1c2   : > { %p1243_p6 = scmp.ne.s32.totalorder %s795_s22, %s1242_s10  ;;  %p1247_p13 = scmp.lt.s32.totalorder %s795_s22, %s1801_s0 }
 0x1c3   : > { %p1248_p4 = scmp.lt.s32.totalorder %s1246_s11, %s1242_s10 }
 0x1c4   : > { %p1244_p11 = pnand %p1243_p6, %p1802_p1 }
 0x1c5   : > { %p1249_p7 = por %p1248_p4, %p1247_p13 }
 0x1c6   : > { %p1245_p9 = pneg %p1244_p11 }
 0x1c8   : > { %p1250_p5 = pnand %p1249_p7, %p1245_p9 }
 0x1ca   : > { %1253 = shalt.err (!%p1250_p5)
}
 0x1cb   : > { %1011 = dma.vmem_to_hbm [thread:$0]  (%p1802_p1), %s798_s1, 256, %s795_s22, %s781_s17  }
 0x1cc PF: > { %s1803_s15 = sld [smem:[#allocation17_spill]]  ;;  %p1806_p2 = scmp.ge.s32.totalorder %s1320_s29, 2 }
 0x1cd   : > { %s1804_s21 = sld [smem:[#allocation18_spill]] }
 0x1d2   : > { %s809_s23 = sand.u32 1, %s1803_s15  }
 0x1d3   : > { %p1805_p3 = scmp.ne.s32.totalorder %s1804_s21, 0  ;;  %s810_s20 = scalar_lea.sflag [#allocation4], %s809_s23 }
 0x1d5   : > { %p1031_p0 = pnand %p1806_p2, %p1805_p3 }
 0x1d7   : > { %p1032_p8 = pneg %p1031_p0 }
 0x1d9   : > { %1295 = dma.done.wait (%p1032_p8), %s810_s20, 256  }
 0x1da   : > { %1297 = vsyncadd (%p1032_p8), %s810_s20, 4294967040  ;;  %s25_s29 = sadd.s32 1, %s1320_s29   ;;  %s1807_s16 = sld [smem:[#allocation20_spill]] }
 0x1db   : > { %p22_p10 = scmp.ge.s32.totalorder %s25_s29, 4   ;;  %s1808_s12 = sld [smem:[#allocation19_spill]] }
 0x1dc   : > { %s1809_s24 = smov %s1304_s25  ;;  %s1810_s25 = smov %s1308_s26 }
 0x1dd   : > { %s1812_s27 = smov %s1316_s28  ;;  %24 = sbr.rel (!%p22_p10) target bundleno = 13 (0xd), region = 131 }
 0x1e0   : > { %s1811_s26 = smov %s1807_s16 }
 0x1e1   : > { %s1813_s28 = smov %s1808_s12 }
 0x1e2   :  { %815 = vsyncpa [#allocation3], 1 }
 0x1e3   :  { %817 = vsyncpa [#allocation3 + $0x1], 1 }
 0x1e4   :  { %818 = vsyncpa [#allocation6], 1 }
 0x1e5   :  { %820 = vsyncpa [#allocation6 + $0x1], 1 }
 0x1e6   :  { %821 = vsyncpa [#allocation9], 1 }
 0x1e7   :  { %822 = vsyncpa [#allocation4], 1 }
 0x1e8   :  { %824 = vsyncpa [#allocation4 + $0x1], 1 }

</bundles_post_ra>
